<compile_context>
chip_gen: v7x
topology: tpu7x:2x2x1
jax: 0.10.0
libtpu: 0.0.40
codegen_flags: <defaults>
</compile_context>

<pallas_src>
import jax
import jax.numpy as jnp
from jax.experimental import pallas as pl
from jax.experimental.pallas import tpu as pltpu


def _round_up(n, m):
    return ((n + m - 1) // m) * m


def _cdiv(a, b):
    return (a + b - 1) // b


def _mlp_kernel(x_ref, w1_ref, b1_ref, w2_ref, b2_ref, w3_ref, b3_ref, o_ref):
    # x block arrives row-major (tb, in_dim) f32 straight from HBM; cast on the VPU.
    xb = x_ref[...].astype(w1_ref.dtype)                                    # (tb, in)

    # Layer 1: w1 @ xᵀ expressed as an NT dot (contract both operands' last dim) so the batch
    # lands on the lane axis without any explicit transpose. f32 accumulation on the MXU.
    h1 = jax.lax.dot_general(
        w1_ref[...], xb,
        dimension_numbers=(((1,), (1,)), ((), ())),
        preferred_element_type=jnp.float32)                                 # (64, tb) f32
    h1 = jnp.maximum(h1 + b1_ref[...], 0.0)
    # Dropout(0.3): identity at inference time (eval mode).

    h2 = jnp.dot(w2_ref[...], h1.astype(w2_ref.dtype),
                 preferred_element_type=jnp.float32)                        # (32, tb) f32
    h2 = jnp.maximum(h2 + b2_ref[...], 0.0)

    out = jnp.dot(w3_ref[...], h2.astype(w3_ref.dtype),
                  preferred_element_type=jnp.float32)                       # (out, tb) f32
    o_ref[...] = (out + b3_ref[...]).astype(o_ref.dtype)


def red_neuronal_forward(x, params, *, compute_dtype=jnp.bfloat16, tb_max=8192,
                         feature_major_output=False):
    """Forward pass of RedNeuronal as a batch-tiled, fused Pallas kernel.

    x: (batch, input_dim) float32
    params (PyTorch layout): w1 (64,in), b1 (64,1), w2 (32,64), b2 (32,1),
                             w3 (out,32), b3 (out,1)
    Returns (batch, out_dim) float32 (or (out_dim, batch) if feature_major_output=True).
    """
    w1, b1 = params["w1"], params["b1"]
    w2, b2 = params["w2"], params["b2"]
    w3, b3 = params["w3"], params["b3"]

    batch, in_dim = x.shape
    out_dim = w3.shape[0]

    # ---- Padding-aware batch-tile selection --------------------------------------------------
    tb_max = max(128, _round_up(int(tb_max), 128))
    num_tiles = _cdiv(batch, tb_max)
    # v7x megacore: guarantee >=2 grid steps when there is enough batch to split.
    if num_tiles == 1 and batch >= 256:
        num_tiles = 2
    tb = _round_up(_cdiv(batch, num_tiles), 128)      # padding waste < 128 rows per tile
    batch_p = num_tiles * tb

    xf = x.astype(jnp.float32)
    if batch_p != batch:
        xf = jnp.pad(xf, ((0, batch_p - batch), (0, 0)))

    w1c = w1.astype(compute_dtype)
    w2c = w2.astype(compute_dtype)
    w3c = w3.astype(compute_dtype)
    b1f = b1.astype(jnp.float32)
    b2f = b2.astype(jnp.float32)
    b3f = b3.astype(jnp.float32)

    grid = (num_tiles,)

    def const_spec(a):
        # Weights/biases: full block, same block every grid step -> stay resident in VMEM.
        return pl.BlockSpec(a.shape, lambda i: (0,) * a.ndim)

    flops = 2 * batch_p * (in_dim * 64 + 64 * 32 + 32 * out_dim)
    bytes_accessed = (
        batch_p * in_dim * 4                       # x read (f32, native layout)
        + batch_p * out_dim * 4                    # output write (f32)
        + sum(int(a.size) * a.dtype.itemsize for a in (w1c, b1f, w2c, b2f, w3c, b3f))
    )

    out_t = pl.pallas_call(
        _mlp_kernel,
        out_shape=jax.ShapeDtypeStruct((out_dim, batch_p), jnp.float32),
        grid=grid,
        in_specs=[
            pl.BlockSpec((tb, in_dim), lambda i: (i, 0)),   # x streamed over batch, native layout
            const_spec(w1c), const_spec(b1f),
            const_spec(w2c), const_spec(b2f),
            const_spec(w3c), const_spec(b3f),
        ],
        out_specs=pl.BlockSpec((out_dim, tb), lambda i: (0, i)),   # lane-dense (batch on lanes)
        compiler_params=pltpu.CompilerParams(
            dimension_semantics=("parallel",),
            # ~7 MiB live at tb=8192; 48 MiB leaves headroom for larger tiles while staying
            # under v7x's 64 MiB physical VMEM (defaults are 16/32 MiB on v5e / v6e+).
            vmem_limit_bytes=48 * 1024 * 1024,
        ),
        cost_estimate=pl.CostEstimate(
            flops=int(flops), transcendentals=0, bytes_accessed=int(bytes_accessed)
        ),
    )(xf, w1c, b1f, w2c, b2f, w3c, b3f)

    out_t = out_t[:, :batch]                 # drop batch padding
    if feature_major_output:
        return out_t                         # (out_dim, batch): no transpose for layout-agnostic users
    return out_t.T                           # (batch, out_dim), PyTorch layout (tiny array)


def init_params(key, input_dim, output_dim):
    """PyTorch nn.Linear-style init: U(-1/sqrt(fan_in), 1/sqrt(fan_in)), weights (out, in)."""
    dims = [(input_dim, 64), (64, 32), (32, output_dim)]
    params = {}
    keys = jax.random.split(key, 2 * len(dims))
    for i, (fan_in, fan_out) in enumerate(dims):
        bound = 1.0 / (fan_in ** 0.5)
        params[f"w{i + 1}"] = jax.random.uniform(
            keys[2 * i], (fan_out, fan_in), minval=-bound, maxval=bound, dtype=jnp.float32)
        params[f"b{i + 1}"] = jax.random.uniform(
            keys[2 * i + 1], (fan_out, 1), minval=-bound, maxval=bound, dtype=jnp.float32)
    return params


def reference_forward(x, params, compute_dtype=jnp.bfloat16):
    """Pure-JAX reference mirroring the kernel's numerics (bf16 matmul inputs, f32 accumulate)."""
    cd = compute_dtype
    h1 = jnp.maximum(
        jnp.dot(x.astype(cd), params["w1"].astype(cd).T,
                preferred_element_type=jnp.float32) + params["b1"].T, 0.0)
    h2 = jnp.maximum(
        jnp.dot(h1.astype(cd), params["w2"].astype(cd).T,
                preferred_element_type=jnp.float32) + params["b2"].T, 0.0)
    return jnp.dot(h2.astype(cd), params["w3"].astype(cd).T,
                   preferred_element_type=jnp.float32) + params["b3"].T


if __name__ == "__main__":
    key = jax.random.PRNGKey(0)
    k_x, k_p, k_x2 = jax.random.split(key, 3)

    batch, input_dim, output_dim = 8, 16, 4
    x = jax.random.normal(k_x, (batch, input_dim), dtype=jnp.float32)
    params = init_params(k_p, input_dim, output_dim)

    out = jax.block_until_ready(red_neuronal_forward(x, params))
    ref = reference_forward(x, params)
    assert out.shape == (batch, output_dim)
    assert jnp.allclose(out, ref, atol=2e-3, rtol=2e-3), "mismatch vs reference (small batch)"

    # Exercise the multi-tile grid (>=2 steps, v7x megacore path) and batch padding.
    batch2 = 2177
    x2 = jax.random.normal(k_x2, (batch2, input_dim), dtype=jnp.float32)
    out2 = jax.block_until_ready(red_neuronal_forward(x2, params))
    ref2 = reference_forward(x2, params)
    assert out2.shape == (batch2, output_dim)
    assert jnp.allclose(out2, ref2, atol=2e-3, rtol=2e-3), "mismatch vs reference (tiled batch)"

    # Feature-major output path (transpose-free for layout-agnostic consumers).
    out3 = jax.block_until_ready(
        red_neuronal_forward(x2, params, feature_major_output=True))
    assert out3.shape == (output_dim, batch2)
    assert jnp.allclose(out3.T, ref2, atol=2e-3, rtol=2e-3), "mismatch vs reference (feature-major)"

    print("KERNEL_OK")
</pallas_src>

<mosaic_0001>
module attributes {stable_mosaic.version = 11 : i64} {
  func.func @_mlp_kernel(%arg0: i32, %arg1: memref<128x16xf32, #tpu.memory_space<vmem>>, %arg2: memref<64x16xbf16, #tpu.memory_space<vmem>>, %arg3: memref<64x1xf32, #tpu.memory_space<vmem>>, %arg4: memref<32x64xbf16, #tpu.memory_space<vmem>>, %arg5: memref<32x1xf32, #tpu.memory_space<vmem>>, %arg6: memref<4x32xbf16, #tpu.memory_space<vmem>>, %arg7: memref<4x1xf32, #tpu.memory_space<vmem>>, %arg8: memref<4x128xf32, #tpu.memory_space<vmem>>) attributes {dimension_semantics = [#tpu.dimension_semantics<parallel>], iteration_bounds = array<i64: 1>, scalar_prefetch = 0 : i64, scratch_operands = 0 : i64, tpu.core_type = #tpu.core_type<tc>, window_params = [{transform_indices = @transform_0, window_bounds = array<i64: 128, 16>}, {pipeline_mode = #tpu.pipeline_mode<synchronous>, transform_indices = @transform_1, window_bounds = array<i64: 64, 16>}, {pipeline_mode = #tpu.pipeline_mode<synchronous>, transform_indices = @transform_2, window_bounds = array<i64: 64, 1>}, {pipeline_mode = #tpu.pipeline_mode<synchronous>, transform_indices = @transform_3, window_bounds = array<i64: 32, 64>}, {pipeline_mode = #tpu.pipeline_mode<synchronous>, transform_indices = @transform_4, window_bounds = array<i64: 32, 1>}, {pipeline_mode = #tpu.pipeline_mode<synchronous>, transform_indices = @transform_5, window_bounds = array<i64: 4, 32>}, {pipeline_mode = #tpu.pipeline_mode<synchronous>, transform_indices = @transform_6, window_bounds = array<i64: 4, 1>}, {transform_indices = @transform_7, window_bounds = array<i64: 4, 128>}]} {
    %c0 = arith.constant 0 : index
    %c0_0 = arith.constant 0 : index
    %0 = vector.load %arg1[%c0, %c0_0] : memref<128x16xf32, #tpu.memory_space<vmem>>, vector<128x16xf32>
    %1 = arith.truncf %0 : vector<128x16xf32> to vector<128x16xbf16>
    %c0_1 = arith.constant 0 : index
    %c0_2 = arith.constant 0 : index
    %2 = vector.load %arg2[%c0_1, %c0_2] : memref<64x16xbf16, #tpu.memory_space<vmem>>, vector<64x16xbf16>
    %cst = arith.constant dense<0.000000e+00> : vector<64x128xf32>
    %3 = tpu.matmul %2, %1, %cst {dimension_numbers = #tpu.dot_dimension_numbers<[1], [1], [0], [0], [0, 0, 1, 0], [], []>} : vector<64x16xbf16>, vector<128x16xbf16>, vector<64x128xf32> -> vector<64x128xf32>
    %c0_3 = arith.constant 0 : index
    %c0_4 = arith.constant 0 : index
    %4 = vector.load %arg3[%c0_3, %c0_4] : memref<64x1xf32, #tpu.memory_space<vmem>>, vector<64x1xf32>
    %5 = vector.broadcast %4 : vector<64x1xf32> to vector<64x128xf32>
    %6 = arith.addf %3, %5 : vector<64x128xf32>
    %cst_5 = arith.constant 0.000000e+00 : f32
    %7 = vector.broadcast %cst_5 : f32 to vector<64x128xf32>
    %8 = arith.maximumf %6, %7 : vector<64x128xf32>
    %c0_6 = arith.constant 0 : index
    %c0_7 = arith.constant 0 : index
    %9 = vector.load %arg4[%c0_6, %c0_7] : memref<32x64xbf16, #tpu.memory_space<vmem>>, vector<32x64xbf16>
    %10 = arith.truncf %8 : vector<64x128xf32> to vector<64x128xbf16>
    %cst_8 = arith.constant dense<0.000000e+00> : vector<32x128xf32>
    %11 = tpu.matmul %9, %10, %cst_8 {dimension_numbers = #tpu.dot_dimension_numbers<[1], [0], [0], [1], [0, 0, 1, 1], [], []>} : vector<32x64xbf16>, vector<64x128xbf16>, vector<32x128xf32> -> vector<32x128xf32>
    %c0_9 = arith.constant 0 : index
    %c0_10 = arith.constant 0 : index
    %12 = vector.load %arg5[%c0_9, %c0_10] : memref<32x1xf32, #tpu.memory_space<vmem>>, vector<32x1xf32>
    %13 = vector.broadcast %12 : vector<32x1xf32> to vector<32x128xf32>
    %14 = arith.addf %11, %13 : vector<32x128xf32>
    %cst_11 = arith.constant 0.000000e+00 : f32
    %15 = vector.broadcast %cst_11 : f32 to vector<32x128xf32>
    %16 = arith.maximumf %14, %15 : vector<32x128xf32>
    %c0_12 = arith.constant 0 : index
    %c0_13 = arith.constant 0 : index
    %17 = vector.load %arg6[%c0_12, %c0_13] : memref<4x32xbf16, #tpu.memory_space<vmem>>, vector<4x32xbf16>
    %18 = arith.truncf %16 : vector<32x128xf32> to vector<32x128xbf16>
    %cst_14 = arith.constant dense<0.000000e+00> : vector<4x128xf32>
    %19 = tpu.matmul %17, %18, %cst_14 {dimension_numbers = #tpu.dot_dimension_numbers<[1], [0], [0], [1], [0, 0, 1, 1], [], []>} : vector<4x32xbf16>, vector<32x128xbf16>, vector<4x128xf32> -> vector<4x128xf32>
    %c0_15 = arith.constant 0 : index
    %c0_16 = arith.constant 0 : index
    %20 = vector.load %arg7[%c0_15, %c0_16] : memref<4x1xf32, #tpu.memory_space<vmem>>, vector<4x1xf32>
    %21 = vector.broadcast %20 : vector<4x1xf32> to vector<4x128xf32>
    %22 = arith.addf %19, %21 : vector<4x128xf32>
    %c0_17 = arith.constant 0 : index
    %c0_18 = arith.constant 0 : index
    %23 = vector.load %arg8[%c0_17, %c0_18] : memref<4x128xf32, #tpu.memory_space<vmem>>, vector<4x128xf32>
    tpu.vector_store %arg8[%c0_17, %c0_18], %22 {strides = array<i32>} : memref<4x128xf32, #tpu.memory_space<vmem>>, vector<4x128xf32>,
    return
  }
  func.func @transform_0(%arg0: i32) -> (i32, i32) {
    %c0_i32 = arith.constant 0 : i32
    %c0_i32_0 = arith.constant 0 : i32
    return %arg0, %c0_i32 : i32, i32
  }
  func.func @transform_1(%arg0: i32) -> (i32, i32) {
    %c0_i32 = arith.constant 0 : i32
    %c0_i32_0 = arith.constant 0 : i32
    %c0_i32_1 = arith.constant 0 : i32
    return %c0_i32, %c0_i32_0 : i32, i32
  }
  func.func @transform_2(%arg0: i32) -> (i32, i32) {
    %c0_i32 = arith.constant 0 : i32
    %c0_i32_0 = arith.constant 0 : i32
    %c0_i32_1 = arith.constant 0 : i32
    return %c0_i32, %c0_i32_0 : i32, i32
  }
  func.func @transform_3(%arg0: i32) -> (i32, i32) {
    %c0_i32 = arith.constant 0 : i32
    %c0_i32_0 = arith.constant 0 : i32
    %c0_i32_1 = arith.constant 0 : i32
    return %c0_i32, %c0_i32_0 : i32, i32
  }
  func.func @transform_4(%arg0: i32) -> (i32, i32) {
    %c0_i32 = arith.constant 0 : i32
    %c0_i32_0 = arith.constant 0 : i32
    %c0_i32_1 = arith.constant 0 : i32
    return %c0_i32, %c0_i32_0 : i32, i32
  }
  func.func @transform_5(%arg0: i32) -> (i32, i32) {
    %c0_i32 = arith.constant 0 : i32
    %c0_i32_0 = arith.constant 0 : i32
    %c0_i32_1 = arith.constant 0 : i32
    return %c0_i32, %c0_i32_0 : i32, i32
  }
  func.func @transform_6(%arg0: i32) -> (i32, i32) {
    %c0_i32 = arith.constant 0 : i32
    %c0_i32_0 = arith.constant 0 : i32
    %c0_i32_1 = arith.constant 0 : i32
    return %c0_i32, %c0_i32_0 : i32, i32
  }
  func.func @transform_7(%arg0: i32) -> (i32, i32) {
    %c0_i32 = arith.constant 0 : i32
    %c0_i32_0 = arith.constant 0 : i32
    return %c0_i32, %arg0 : i32, i32
  }
}

</mosaic_0001>

<bundles_post_ra>
// kernel: tpu_custom_call.1
= control target key start
LH: loop header
LB: loop body
LE: loop exit
PB: predicated region body
PF: predicated region fallthrough
CT: control target
= control target key end

     0   :  { %vm128_vm0 = vcmask 130048   ;;  %v530_v5 = vmov 0   ;;  %s716_s0 = inlined_call_operand.vmem [shape: f32[128,16], index: 0, kind: input, shape index: {}]   ;;  %s717_s1 = inlined_call_operand.vmem [shape: bf16[64,16], index: 1, kind: input, shape index: {}]   ;;  %s718_s2 = inlined_call_operand.vmem [shape: f32[64,1], index: 2, kind: input, shape index: {}]   ;;  %s719_s3 = inlined_call_operand.vmem [shape: bf16[32,64], index: 3, kind: input, shape index: {}]   ;;  %s720_s4 = inlined_call_operand.vmem [shape: f32[32,1], index: 4, kind: input, shape index: {}]   ;;  %s721_s5 = inlined_call_operand.vmem [shape: bf16[4,32], index: 5, kind: input, shape index: {}]   ;;  %s722_s6 = inlined_call_operand.vmem [shape: f32[4,1], index: 6, kind: input, shape index: {}]   ;;  %s723_s7 = inlined_call_operand.hbm [shape: f32[4,128], index: 7, kind: output, shape index: {}]  }
   0x1   :  { %v28_v0 = vld [vmem:[%s716_s0] sm:$0xff]  ;;  %v29_v1 = vld [vmem:[%s716_s0 + $0x8] sm:$0xff]  ;;  %v30_v2 = vld [vmem:[%s716_s0 + $0x10] sm:$0xff]  ;;  %498 = vset.pattern.permute.xlu0 %v530_v5  ;;  %499 = vset.pattern.permute.xlu1 %v530_v5 }
   0x2   :  { %v44_v3 = vpack.c.bf16 %v29_v1, %v28_v0  ;;  %v31_v4 = vld [vmem:[%s716_s0 + $0x18] sm:$0xff]  ;;  %v32_v8 = vld [vmem:[%s716_s0 + $0x20] sm:$0xff]  ;;  %v33_v9 = vld [vmem:[%s716_s0 + $0x28] sm:$0xff] }
   0x3   :  { %v45_v6 = vpack.c.bf16 %v31_v4, %v30_v2  ;;  %v500_v10 = vld [vmem:[%s717_s1] sm:$0xff]   ;;  %v46_v12 = vpack.c.bf16 %v33_v9, %v32_v8  ;;  %v62_v14 = vld [vmem:[%s718_s2 + $0x10] sm:$0xff]  ;;  %v61_v15 = vld [vmem:[%s718_s2 + $0x8] sm:$0xff] }
   0x4   :  { %486 = vmatprep.subr.msk.bf16.mxu0 %vm128_vm0, %v44_v3  ;;  %v142_v7 = vsel %vm128_vm0, %v44_v3, 0  ;;  %458 = vmatprep.mubr.msk.bf16.mxu0 %vm128_vm0, %v500_v10  ;;  %v60_v13 = vld [vmem:[%s718_s2] sm:$0xff]  ;;  %v63_v16 = vld [vmem:[%s718_s2 + $0x18] sm:$0xff]  ;;  %v34_v17 = vld [vmem:[%s716_s0 + $0x30] sm:$0xff] }
   0x5   :  { %443 = vmatpush3.bf16.xpose.msra.mxu0 %v142_v7  ;;  %v145_v11 = vsel %vm128_vm0, %v45_v6, 0  ;;  %70 = vperm.xlu0 %498, %v60_v13   ;;  %v35_v18 = vld [vmem:[%s716_s0 + $0x38] sm:$0xff]  ;;  %v64_v19 = vld [vmem:[%s718_s2 + $0x20] sm:$0xff] }
   0x6   :  { %487 = vmatprep.subr.msk.bf16.mxu0 %vm128_vm0, %v45_v6  ;;  %80 = vperm.xlu1 %499, %v62_v14  }
   0x9   :  { %75 = vperm.xlu0 %498, %v61_v15  }
   0xa   :  { %85 = vperm.xlu1 %499, %v63_v16  }
   0xd   :  { %445 = vmatpush3.bf16.xpose.msra.mxu0 %v145_v11 }
   0xe   :  { %488 = vmatprep.subr.msk.bf16.mxu0 %vm128_vm0, %v46_v12 }
   0xf   :  { %12 = vsyncpa [#allocation3], 0  ;;  %v65_v20 = vld [vmem:[%s718_s2 + $0x28] sm:$0xff]  ;;  %v148_v21 = vsel %vm128_vm0, %v46_v12, 0  ;;  %v47_v22 = vpack.c.bf16 %v35_v18, %v34_v17  ;;  %90 = vperm.xlu0 %498, %v64_v19   ;;  %v66_v23 = vld [vmem:[%s718_s2 + $0x30] sm:$0xff]  ;;  %vm280_vm1 = vcmask 523264  }
  0x10   :  { %95 = vperm.xlu1 %499, %v65_v20   ;;  %v67_v24 = vld [vmem:[%s718_s2 + $0x38] sm:$0xff]  ;;  %v36_v25 = vld [vmem:[%s716_s0 + $0x40] sm:$0xff]  ;;  %v37_v26 = vld [vmem:[%s716_s0 + $0x48] sm:$0xff]  ;;  %vm532_vm2 = vmmov 0   ;;  %vm349_vm3 = vcmask 261120   ;;  %s533_s20 = smov [#allocation2]  }
  0x11   :  { %v246_v27 = vld [vmem:[%s720_s4] sm:$0xff]  ;;  %v247_v28 = vld [vmem:[%s720_s4 + $0x8] sm:$0xff]  ;;  %v151_v29 = vsel %vm128_vm0, %v47_v22, 0  ;;  %v48_v30 = vpack.c.bf16 %v37_v26, %v36_v25  ;;  %v248_v31 = vld [vmem:[%s720_s4 + $0x10] sm:$0xff]  ;;  %s400_s21 = sshll.u32 %s533_s20, 4  ;;  %s401_s21 = int_to_ptr.vmem [resolvable:$true] %s400_s21 }
  0x12   :  { %v249_v32 = vld [vmem:[%s720_s4 + $0x18] sm:$0xff]  ;;  %v38_v33 = vld [vmem:[%s716_s0 + $0x50] sm:$0xff]  ;;  %v343_v35 = vld [vmem:[%s722_s6] sm:$0xf]  ;;  %s506_s22 = scalar_lea.vmem %s401_s21, 64  ;;  %p511_p1 = scmp.lt.s32.totalorder %s401_s21, %s401_s21 }
  0x13   :  { %100 = vperm.xlu0 %498, %v66_v23   ;;  %v39_v34 = vld [vmem:[%s716_s0 + $0x58] sm:$0xff]  ;;  %v154_v36 = vsel %vm128_vm0, %v48_v30, 0  ;;  %v40_v38 = vld [vmem:[%s716_s0 + $0x60] sm:$0xff]  ;;  %v41_v39 = vld [vmem:[%s716_s0 + $0x68] sm:$0xff]  ;;  %p507_p0 = scmp.ne.s32.totalorder %s401_s21, %s506_s22  ;;  %p512_p2 = scmp.lt.s32.totalorder %s506_s22, %s506_s22 }
  0x14   :  { %105 = vperm.xlu1 %499, %v67_v24   ;;  %v49_v37 = vpack.c.bf16 %v39_v34, %v38_v33  ;;  %v50_v41 = vpack.c.bf16 %v41_v39, %v40_v38  ;;  %v42_v42 = vld [vmem:[%s716_s0 + $0x70] sm:$0xff]  ;;  %v43_v43 = vld [vmem:[%s716_s0 + $0x78] sm:$0xff]  ;;  %v501_v47 = vld [vmem:[%s717_s1 + $0x8] sm:$0xff]   ;;  %v531_v24 = vmov 0.0  }
  0x15   :  { %447 = vmatpush3.bf16.xpose.msra.mxu0 %v148_v21  ;;  %v51_v45 = vpack.c.bf16 %v43_v43, %v42_v42  ;;  %v502_v48 = vld [vmem:[%s717_s1 + $0x10] sm:$0xff]   ;;  %v503_v49 = vld [vmem:[%s717_s1 + $0x18] sm:$0xff]   ;;  %v504_v50 = vld [vmem:[%s719_s3] sm:$0xff]   ;;  %p513_p3 = por %p512_p2, %p511_p1 }
  0x16   :  { %489 = vmatprep.subr.msk.bf16.mxu0 %vm128_vm0, %v47_v22  ;;  %v157_v40 = vsel %vm128_vm0, %v49_v37, 0  ;;  %v160_v44 = vsel %vm128_vm0, %v50_v41, 0  ;;  %474 = vmatprep.mubr.msk.bf16.mxu1 %vm280_vm1, %v504_v50  ;;  %v505_v23 = vld [vmem:[%s719_s3 + $0x8] sm:$0xff]   ;;  %v340_v43 = vld [vmem:[%s721_s5] sm:$0x3] }
  0x17   :  { %252 = vperm.xlu0 %498, %v246_v27   ;;  %v163_v46 = vsel %vm128_vm0, %v51_v45, 0  ;;  %p514_p4 = pnand %p513_p3, %p507_p0 }
  0x18   :  { %257 = vperm.xlu1 %499, %v247_v28  }
  0x1b   :  { %262 = vperm.xlu0 %498, %v248_v31  }
  0x1c   :  { %267 = vperm.xlu1 %499, %v249_v32  }
  0x1d   :  { %449 = vmatpush3.bf16.xpose.msra.mxu0 %v151_v29 }
  0x1e   :  { %490 = vmatprep.subr.msk.bf16.mxu0 %vm128_vm0, %v48_v30 }
  0x1f   :  { %346 = vperm.xlu0 %498, %v343_v35  }
  0x25   :  { %451 = vmatpush3.bf16.xpose.msra.mxu0 %v154_v36 }
  0x26   :  { %491 = vmatprep.subr.msk.bf16.mxu0 %vm128_vm0, %v49_v37 }
  0x2d   :  { %453 = vmatpush3.bf16.xpose.msra.mxu0 %v157_v40 }
  0x2e   :  { %492 = vmatprep.subr.msk.bf16.mxu0 %vm128_vm0, %v50_v41 }
  0x35   :  { %455 = vmatpush3.bf16.xpose.msra.mxu0 %v160_v44 }
  0x36   :  { %493 = vmatprep.subr.msk.bf16.mxu0 %vm128_vm0, %v51_v45 }
  0x3d   :  { %457 = vmatpush3.bf16.xpose.msra.mxu0 %v163_v46 }
  0x44   :  { %459 = vmatmul.mubr.msk.bf16.vlgmr.msra.gmra.mrb[0].mxu0 %vm128_vm0, %v501_v47 }
  0x45   :  { %462 = vmatprep.mubr.msk.bf16.mxu0 %vm128_vm0, %v502_v48 }
  0x4c   :  { %463 = vmatmul.mubr.msk.bf16.gmra.mrb[4].mxu0 %vm128_vm0, %v503_v49 }
  0x84   :  { %v71_v51 = vpop.permute.xlu0 %70 }
  0x85   :  { %v81_v52 = vpop.permute.xlu1 %80 }
  0x88   :  { %v76_v53 = vpop.permute.xlu0 %75 }
  0x89   :  { %v86_v54 = vpop.permute.xlu1 %85 }
  0x8e   :  { %v91_v58 = vpop.permute.xlu0 %90 }
  0x8f   :  { %v96_v63 = vpop.permute.xlu1 %95 }
  0x92   :  { %v101_v6 = vpop.permute.xlu0 %100 }
  0x93   :  { %v106_v11 = vpop.permute.xlu1 %105 }
  0x96   :  { %v253_v25 = vpop.permute.xlu0 %252 }
  0x97   :  { %v258_v26 = vpop.permute.xlu1 %257 }
  0x9a   :  { %v263_v27 = vpop.permute.xlu0 %262 }
  0x9b   :  { %v268_v31 = vpop.permute.xlu1 %267 }
  0x9e   :  { %v347_v44 = vpop.permute.xlu0 %346 }
 0x117   :  { %v460_v55 = vpop.f32.mrb[0].mxu0 }
 0x118   :  { %v208_v56 = vadd.f32 %v460_v55, %v81_v52  ;;  %v199_v57 = vpop.f32.mrb[1].mxu0 }
 0x119   :  { %v200_v59 = vadd.f32 %v199_v57, %v71_v51  ;;  %v461_v60 = vpop.f32.mrb[2].mxu0 }
 0x11a   :  { %v211_v61 = vadd.f32 %v461_v60, %v86_v54  ;;  %v202_v62 = vpop.f32.mrb[3].mxu0  ;;  %v232_v1 = vmax.f32 %v208_v56, 0.0 }
 0x11b   :  { %v203_v0 = vadd.f32 %v202_v62, %v76_v53  ;;  %v230_v3 = vmax.f32 %v200_v59, 0.0 }
 0x11c   :  { %v233_v2 = vmax.f32 %v211_v61, 0.0 }
 0x11d   :  { %v231_v4 = vmax.f32 %v203_v0, 0.0 }
 0x11e   :  { %v243_v5 = vpack.c.bf16 %v233_v2, %v232_v1 }
 0x11f   :  { %v464_v7 = vpop.f32.mrb[4].mxu0  ;;  %v242_v8 = vpack.c.bf16 %v231_v4, %v230_v3 }
 0x120   :  { %v224_v9 = vadd.f32 %v464_v7, %v101_v6  ;;  %v215_v10 = vpop.f32.mrb[5].mxu0 }
 0x121   :  { %v216_v12 = vadd.f32 %v215_v10, %v91_v58  ;;  %v465_v13 = vpop.f32.mrb[6].mxu0  ;;  %466 = vmatprep.subr.bf16.mxu1 %v242_v8 }
 0x122   :  { %v227_v14 = vadd.f32 %v465_v13, %v106_v11  ;;  %v218_v15 = vpop.f32.mrb[7].mxu0  ;;  %467 = vmatpush3.bf16.msra.mxu1 %v242_v8  ;;  %v236_v17 = vmax.f32 %v224_v9, 0.0 }
 0x123   :  { %v219_v16 = vadd.f32 %v218_v15, %v96_v63  ;;  %468 = vmatprep.subr.bf16.mxu1 %v243_v5  ;;  %v234_v19 = vmax.f32 %v216_v12, 0.0 }
 0x124   :  { %v237_v18 = vmax.f32 %v227_v14, 0.0 }
 0x125   :  { %v235_v20 = vmax.f32 %v219_v16, 0.0 }
 0x126   :  { %v245_v21 = vpack.c.bf16 %v237_v18, %v236_v17  ;;  %469 = vmatpush3.bf16.msra.mxu1 %v243_v5 }
 0x127   :  { %v244_v22 = vpack.c.bf16 %v235_v20, %v234_v19 }
 0x129   :  { %470 = vmatprep.subr.bf16.mxu1 %v244_v22 }
 0x12a   :  { %471 = vmatpush3.bf16.msra.mxu1 %v244_v22 }
 0x12b   :  { %472 = vmatprep.subr.bf16.mxu1 %v245_v21 }
 0x12e   :  { %473 = vmatpush3.bf16.msra.mxu1 %v245_v21 }
 0x12f   :  { %478 = vmatprep.subr.bf16.mxu1 %v531_v24 }
 0x131   :  { %475 = vmatmul.mubr.msk.bf16.vlgmr.msra.gmra.mrb[0].mxu1 %vm280_vm1, %v505_v23 }
 0x132   :  { %482 = vmatprep.mubr.msk.bf16.mxu1 %vm532_vm2, %v531_v24 }
 0x204   :  { %v476_v28 = vpop.f32.mrb[0].mxu1 }
 0x205   :  { %v330_v29 = vadd.f32 %v476_v28, %v263_v27  ;;  %v321_v30 = vpop.f32.mrb[1].mxu1 }
 0x206   :  { %v322_v32 = vadd.f32 %v321_v30, %v253_v25  ;;  %v477_v33 = vpop.f32.mrb[2].mxu1 }
 0x207   :  { %v333_v34 = vadd.f32 %v477_v33, %v268_v31  ;;  %v324_v35 = vpop.f32.mrb[3].mxu1  ;;  %v338_v37 = vmax.f32 %v330_v29, 0.0 }
 0x208   :  { %v325_v36 = vadd.f32 %v324_v35, %v258_v26  ;;  %v336_v39 = vmax.f32 %v322_v32, 0.0 }
 0x209   :  { %v339_v38 = vmax.f32 %v333_v34, 0.0 }
 0x20a   :  { %v337_v40 = vmax.f32 %v325_v36, 0.0 }
 0x20b   :  { %v342_v41 = vpack.c.bf16 %v339_v38, %v338_v37 }
 0x20c   :  { %v341_v42 = vpack.c.bf16 %v337_v40, %v336_v39 }
 0x20e   :  { %479 = vmatpush3.bf16.msra.mxu1 %v341_v42 }
 0x20f   :  { %480 = vmatprep.subr.bf16.mxu1 %v531_v24 }
 0x212   :  { %481 = vmatpush3.bf16.msra.mxu1 %v342_v41 }
 0x215   :  { %483 = vmatmul.mubr.msk.bf16.vlgmr.msra.gmra.mrb[4].mxu1 %vm349_vm3, %v340_v43 }
 0x2e8   :  { %v387_v45 = vpop.f32.mrb[4].mxu1 }
 0x2e9   :  { %v388_v46 = vadd.f32 %v387_v45, %v347_v44  ;;  %v484_v47 = vpop.f32.mrb[5].mxu1 }
 0x2ea   :  { %v390_v48 = vpop.f32.mrb[6].mxu1 }
 0x2eb   :  { %393 = vst [vmem:[#allocation2] sm:$0xf] %v388_v46  ;;  %v485_v49 = vpop.f32.mrb[7].mxu1 }
 0x2ec   :  { %517 = shalt.err (!%p514_p4)
}
 0x2ed   :  { %s518_s24 = scalar_lea.hbm %s723_s7, 64 }
 0x2ee   :  { %p519_p5 = scmp.ne.s32.totalorder %s723_s7, %s518_s24  ;;  %p522_p6 = scmp.lt.u32.totalorder %s518_s24, %s723_s7 }
 0x2f0   :  { %p524_p7 = pnand %p522_p6, %p519_p5 }
 0x2f2   :  { %527 = shalt.err (!%p524_p7)
}
 0x2f3   :  { %403 = dma.vmem_to_hbm [thread:$0]  %s401_s21, 64, %s723_s7, [#allocation3]  }
 0x2f4   :  { %528 = dma.done.wait [#allocation3], 64  }
 0x2f5   :  { %529 = vsyncadd [#allocation3], 4294967232 }
 0x2f6   :  { %407 = vsyncpa [#allocation3], 1 }

</bundles_post_ra>
